<compile_context>
chip_gen: v5e
topology: v5e:2x2
jax: 0.10.0
libtpu: 0.0.40
codegen_flags: <defaults>
</compile_context>

<pallas_src>
import math
import functools

import jax
import jax.numpy as jnp
from jax import lax
from jax.experimental import pallas as pl
from jax.experimental.pallas import tpu as pltpu


def _round_up(x, m):
    return ((x + m - 1) // m) * m


def _cdiv(a, b):
    return (a + b - 1) // b


def _general_quadratic_kernel(x_ref, wa_ref, o_ref, xx_ref, acc_ref, *,
                              single_batch_tile, has_bias):
    """One (block_b, block_o) output tile, accumulated over the K grid axis.

    x_ref  : (block_b, F)            batch tile of the input
    wa_ref : (block_o, tk)           K-chunk of the fused [Wa | W | bias] weights
    o_ref  : (block_b, block_o)      output tile
    xx_ref : (num_k, block_b, tk)    VMEM scratch: chunked [x_i*x_j | x | 1] slab
    acc_ref: (block_b, block_o) f32  accumulator scratch
    """
    o_idx = pl.program_id(0)
    k_idx = pl.program_id(2)
    num_k = pl.num_programs(2)

    tb, f = x_ref.shape
    tk = xx_ref.shape[2]
    k_pad = xx_ref.shape[0] * tk
    k_quad = f * f
    k_valid = k_quad + f + (1 if has_bias else 0)

    # Rebuild the xx slab only when the batch block (can have) changed:
    # always at k == 0; with a single batch tile only at the first o tile
    # (o axis is marked "arbitrary" in that case, so o == 0 runs first and
    # the per-core VMEM scratch is guaranteed to be initialized).
    build = k_idx == 0
    if single_batch_tile:
        build = jnp.logical_and(build, o_idx == 0)

    @pl.when(build)
    def _build_xx():
        x = x_ref[...].astype(xx_ref.dtype)
        # Quadratic block: xx[b, i*F + j] = x[b, i] * x[b, j].
        # tk is a multiple of F, so each F-wide row slab lands wholly inside
        # one K chunk; all chunk/lane offsets below are static Python ints.
        for i in range(f):
            c, lo = divmod(i * f, tk)
            xx_ref[c, :, lo:lo + f] = x[:, i:i + 1] * x
        # Fused linear block: xx[b, F*F + j] = x[b, j].
        c, lo = divmod(k_quad, tk)
        xx_ref[c, :, lo:lo + f] = x
        if has_bias:
            c, lo = divmod(k_quad + f, tk)
            xx_ref[c, :, lo:lo + 1] = jnp.ones((tb, 1), xx_ref.dtype)
        # Zero the K padding so uninitialized VMEM cannot leak into the dot
        # (the padded Wa columns are zero as well).
        pos = k_valid
        while pos < k_pad:
            c, lo = divmod(pos, tk)
            width = min(tk - lo, k_pad - pos)
            xx_ref[c, :, lo:lo + width] = jnp.zeros((tb, width), xx_ref.dtype)
            pos += width

    @pl.when(k_idx == 0)
    def _init_acc():
        acc_ref[...] = jnp.zeros_like(acc_ref)

    # One MXU contraction per K chunk, f32 accumulation.
    acc_ref[...] += lax.dot_general(
        xx_ref[k_idx], wa_ref[...],
        (((1,), (1,)), ((), ())),              # contract axis 1 with axis 1
        preferred_element_type=jnp.float32)

    @pl.when(k_idx == num_k - 1)
    def _finalize():
        o_ref[...] = (acc_ref[...] * 0.5).astype(o_ref.dtype)


@functools.partial(jax.jit, static_argnames=("block_b", "block_o",
                                              "max_k_chunk", "weights_dtype"))
def general_quadratic(x, weight_a, weight, bias=None, *,
                      block_b=256, block_o=128, max_k_chunk=8192,
                      weights_dtype=None):
    """(bilinear(x, x, Wa) + linear(x, W, bias)) / 2 via a tiled Pallas kernel."""
    B, F = x.shape
    O = weight.shape[0]
    has_bias = bias is not None

    compute_dtype = (jnp.dtype(weights_dtype) if weights_dtype is not None
                     else jnp.dtype(weight_a.dtype))
    x_itemsize = jnp.dtype(x.dtype).itemsize
    c_itemsize = compute_dtype.itemsize
    o_itemsize = jnp.dtype(x.dtype).itemsize

    # ---- fused weight matrix along K: [Wa.reshape(O, F*F) | W | bias] ------
    parts = [weight_a.reshape(O, F * F), weight]
    if has_bias:
        parts.append(bias.reshape(O, 1))
    wa_cat = jnp.concatenate(parts, axis=1).astype(compute_dtype)
    k_total = F * F + F + (1 if has_bias else 0)

    # ---- K tiling: chunks are multiples of lcm(128, F) so every outer-
    #      product row lands wholly inside one chunk, and every chunk is
    #      128-lane aligned for the Wa BlockSpec. ----------------------------
    chunk_align = (128 * F) // math.gcd(128, F)
    k_aligned = _round_up(k_total, chunk_align)
    tk = min(max(chunk_align, (max_k_chunk // chunk_align) * chunk_align),
             k_aligned)
    num_k = _cdiv(k_aligned, tk)
    tk = _round_up(_cdiv(k_aligned, num_k), chunk_align)   # even-ish chunks
    k_pad = num_k * tk

    # ---- block sizes --------------------------------------------------------
    # Sublane minimum by narrowest streamed dtype (8 f32, 16 bf16, 32 int8/fp8).
    sublane = max(8, 32 // min(x_itemsize, c_itemsize))
    block_b = min(block_b, _round_up(B, sublane))
    block_b = max(sublane, (block_b // sublane) * sublane)
    # Keep the resident xx slab (num_k, block_b, tk) within ~8 MiB of VMEM.
    xx_budget = 8 * 1024 * 1024
    while block_b > sublane and block_b * k_pad * c_itemsize > xx_budget:
        block_b = max(sublane, _round_up(block_b // 2, sublane))

    # Do NOT over-pad a small O up to 128: Wa is the dominant HBM stream.
    block_o = min(block_o, _round_up(O, sublane))
    o_pad = _round_up(O, block_o)
    b_pad = _round_up(B, block_b)

    o_tiles = o_pad // block_o
    b_tiles = b_pad // block_b
    single_batch_tile = b_tiles == 1

    # ---- host-side zero padding (free under XLA, sliced off at the end) ----
    x_p = jnp.pad(x, ((0, b_pad - B), (0, 0)))
    wa_p = jnp.pad(wa_cat, ((0, o_pad - O), (0, k_pad - k_total)))

    # ---- megacore (v7x) axis choice -----------------------------------------
    # single batch tile  -> o must stay "arbitrary" (build-once guard relies on
    #                       sequential o starting at 0; regime is Wa-bandwidth
    #                       bound anyway, so megacore would not help).
    # multiple b tiles   -> o parallel when >=2 o tiles, else b parallel.
    if single_batch_tile:
        o_sem, b_sem = "arbitrary", "arbitrary"
    else:
        o_sem = "parallel" if o_tiles >= 2 else "arbitrary"
        b_sem = "parallel" if (o_tiles < 2 and b_tiles >= 2) else "arbitrary"
    dim_sems = (o_sem, b_sem, "arbitrary")   # K axis is a reduction

    # ---- explicit scoped-VMEM budget (v5e default is only 16 MiB) ----------
    vmem_bytes = (2 * block_o * tk * c_itemsize        # Wa tile, double buffered
                  + 2 * block_b * F * x_itemsize       # x tile
                  + 2 * block_b * block_o * o_itemsize # out tile
                  + num_k * block_b * tk * c_itemsize  # xx scratch
                  + block_b * block_o * 4              # acc scratch
                  + (2 << 20))                         # headroom
    vmem_limit = int(min(64 << 20, max(32 << 20, vmem_bytes)))

    kernel = functools.partial(_general_quadratic_kernel,
                               single_batch_tile=single_batch_tile,
                               has_bias=has_bias)

    out = pl.pallas_call(
        kernel,
        out_shape=jax.ShapeDtypeStruct((b_pad, o_pad), x.dtype),
        grid_spec=pltpu.PrefetchScalarGridSpec(
            num_scalar_prefetch=0,
            # batch axis inside the o axis -> the Wa K-chunk is not re-DMA'd
            # while batch tiles iterate; K (reduction) innermost.
            grid=(o_tiles, b_tiles, num_k),
            in_specs=[
                pl.BlockSpec((block_b, F), lambda o, b, k: (b, 0)),      # x
                pl.BlockSpec((block_o, tk), lambda o, b, k: (o, k)),     # Wa_cat
            ],
            out_specs=pl.BlockSpec((block_b, block_o), lambda o, b, k: (b, o)),
            scratch_shapes=[
                pltpu.VMEM((num_k, block_b, tk), compute_dtype),  # xx slab
                pltpu.VMEM((block_b, block_o), jnp.float32),      # f32 acc
            ],
        ),
        compiler_params=pltpu.CompilerParams(
            dimension_semantics=dim_sems,
            vmem_limit_bytes=vmem_limit,
        ),
    )(x_p, wa_p)

    return out[:B, :O]


def init_params(key, in_features, out_features, with_bias=False):
    """Deterministic re-implementation of General_quadratic.reset_parameters()."""
    k_a, k_w, k_b = jax.random.split(key, 3)
    bound = 1.0 / in_features
    wa = bound * jax.random.normal(
        k_a, (out_features, in_features, in_features), dtype=jnp.float32)
    wa = 0.5 * (wa + jnp.swapaxes(wa, -1, -2))            # symmetrize
    w = -math.sqrt(bound) + math.sqrt(bound) * jax.random.normal(
        k_w, (out_features, in_features), dtype=jnp.float32)
    if with_bias:
        b = jax.random.uniform(k_b, (out_features,), jnp.float32,
                               -math.sqrt(bound), math.sqrt(bound))
        return wa, w, b
    return wa, w


def reference(x, weight_a, weight, bias=None):
    """Pure-JAX reference of the PyTorch forward."""
    quad = jnp.einsum('bi,oij,bj->bo', x, weight_a, x)
    lin = x @ weight.T
    if bias is not None:
        lin = lin + bias
    return (quad + lin) / 2.0


if __name__ == "__main__":
    key = jax.random.PRNGKey(0)
    k_x, k_p, k_x2 = jax.random.split(key, 3)

    # ---- Case 1: module defaults (bias=False), small shapes ----------------
    B, F, O = 8, 32, 16
    x = jax.random.normal(k_x, (B, F), dtype=jnp.float32)
    wa, w = init_params(k_p, F, O)
    out = jax.block_until_ready(general_quadratic(x, wa, w))
    ref = reference(x, wa, w)
    assert out.shape == (B, O)
    assert jnp.allclose(out, ref, atol=1e-4, rtol=1e-4), (
        f"case1 max abs err = {jnp.max(jnp.abs(out - ref))}")

    # ---- Case 2: bias=True path, forced K-split (num_k > 1) ----------------
    wa2, w2, b2 = init_params(k_p, F, O, with_bias=True)
    out2 = jax.block_until_ready(
        general_quadratic(x, wa2, w2, b2, max_k_chunk=512))
    ref2 = reference(x, wa2, w2, b2)
    assert jnp.allclose(out2, ref2, atol=1e-4, rtol=1e-4), (
        f"case2 max abs err = {jnp.max(jnp.abs(out2 - ref2))}")

    # ---- Case 3: multiple batch tiles + ragged O (no over-pad to 128) ------
    B3, O3 = 40, 12
    x3 = jax.random.normal(k_x2, (B3, F), dtype=jnp.float32)
    wa3, w3 = init_params(k_p, F, O3)
    out3 = jax.block_until_ready(general_quadratic(x3, wa3, w3, block_b=16))
    ref3 = reference(x3, wa3, w3)
    assert out3.shape == (B3, O3)
    assert jnp.allclose(out3, ref3, atol=1e-4, rtol=1e-4), (
        f"case3 max abs err = {jnp.max(jnp.abs(out3 - ref3))}")

    print("KERNEL_OK")
</pallas_src>

<mosaic_0001>
module attributes {stable_mosaic.version = 11 : i64} {
  func.func @_general_quadratic_kernel(%arg0: i32, %arg1: i32, %arg2: i32, %arg3: memref<8x32xf32, #tpu.memory_space<vmem>>, %arg4: memref<16x1152xf32, #tpu.memory_space<vmem>>, %arg5: memref<8x16xf32, #tpu.memory_space<vmem>>, %arg6: memref<1x8x1152xf32, #tpu.memory_space<vmem>>, %arg7: memref<8x16xf32, #tpu.memory_space<vmem>>) attributes {dimension_semantics = [#tpu.dimension_semantics<arbitrary>, #tpu.dimension_semantics<arbitrary>, #tpu.dimension_semantics<arbitrary>], iteration_bounds = array<i64: 1, 1, 1>, scalar_prefetch = 0 : i64, scratch_operands = 2 : i64, tpu.core_type = #tpu.core_type<tc>, window_params = [{transform_indices = @transform_0, window_bounds = array<i64: 8, 32>}, {transform_indices = @transform_1, window_bounds = array<i64: 16, 1152>}, {transform_indices = @transform_2, window_bounds = array<i64: 8, 16>}]} {
    %c0_i32 = arith.constant 0 : i32
    %0 = arith.cmpi eq, %arg2, %c0_i32 : i32
    %c0_i32_0 = arith.constant 0 : i32
    %1 = arith.cmpi eq, %arg0, %c0_i32_0 : i32
    %2 = arith.andi %0, %1 : i1
    %3 = arith.extui %2 : i1 to i32
    %c0_i32_1 = arith.constant 0 : i32
    %4 = arith.cmpi ne, %3, %c0_i32_1 : i32
    scf.if %4 {
      %c0_13 = arith.constant 0 : index
      %c0_14 = arith.constant 0 : index
      %19 = vector.load %arg3[%c0_13, %c0_14] : memref<8x32xf32, #tpu.memory_space<vmem>>, vector<8x32xf32>
      %20 = vector.extract_strided_slice %19 {offsets = [0, 0], sizes = [8, 1], strides = [1, 1]} : vector<8x32xf32> to vector<8x1xf32>
      %21 = vector.broadcast %20 : vector<8x1xf32> to vector<8x32xf32>
      %22 = arith.mulf %21, %19 : vector<8x32xf32>
      %c0_15 = arith.constant 0 : index
      %c0_16 = arith.constant 0 : index
      %c0_17 = arith.constant 0 : index
      %23 = vector.load %arg6[%c0_15, %c0_16, %c0_17] : memref<1x8x1152xf32, #tpu.memory_space<vmem>>, vector<1x8x32xf32>
      %24 = vector.shape_cast %23 : vector<1x8x32xf32> to vector<8x32xf32>
      %25 = vector.shape_cast %22 : vector<8x32xf32> to vector<1x8x32xf32>
      tpu.vector_store %arg6[%c0_15, %c0_16, %c0_17], %25 {strides = array<i32>} : memref<1x8x1152xf32, #tpu.memory_space<vmem>>, vector<1x8x32xf32>,
      %26 = vector.extract_strided_slice %19 {offsets = [0, 1], sizes = [8, 1], strides = [1, 1]} : vector<8x32xf32> to vector<8x1xf32>
      %27 = vector.broadcast %26 : vector<8x1xf32> to vector<8x32xf32>
      %28 = arith.mulf %27, %19 : vector<8x32xf32>
      %c0_18 = arith.constant 0 : index
      %c0_19 = arith.constant 0 : index
      %c32 = arith.constant 32 : index
      %29 = vector.load %arg6[%c0_18, %c0_19, %c32] : memref<1x8x1152xf32, #tpu.memory_space<vmem>>, vector<1x8x32xf32>
      %30 = vector.shape_cast %29 : vector<1x8x32xf32> to vector<8x32xf32>
      %31 = vector.shape_cast %28 : vector<8x32xf32> to vector<1x8x32xf32>
      tpu.vector_store %arg6[%c0_18, %c0_19, %c32], %31 {strides = array<i32>} : memref<1x8x1152xf32, #tpu.memory_space<vmem>>, vector<1x8x32xf32>,
      %32 = vector.extract_strided_slice %19 {offsets = [0, 2], sizes = [8, 1], strides = [1, 1]} : vector<8x32xf32> to vector<8x1xf32>
      %33 = vector.broadcast %32 : vector<8x1xf32> to vector<8x32xf32>
      %34 = arith.mulf %33, %19 : vector<8x32xf32>
      %c0_20 = arith.constant 0 : index
      %c0_21 = arith.constant 0 : index
      %c64 = arith.constant 64 : index
      %35 = vector.load %arg6[%c0_20, %c0_21, %c64] : memref<1x8x1152xf32, #tpu.memory_space<vmem>>, vector<1x8x32xf32>
      %36 = vector.shape_cast %35 : vector<1x8x32xf32> to vector<8x32xf32>
      %37 = vector.shape_cast %34 : vector<8x32xf32> to vector<1x8x32xf32>
      tpu.vector_store %arg6[%c0_20, %c0_21, %c64], %37 {strides = array<i32>} : memref<1x8x1152xf32, #tpu.memory_space<vmem>>, vector<1x8x32xf32>,
      %38 = vector.extract_strided_slice %19 {offsets = [0, 3], sizes = [8, 1], strides = [1, 1]} : vector<8x32xf32> to vector<8x1xf32>
      %39 = vector.broadcast %38 : vector<8x1xf32> to vector<8x32xf32>
      %40 = arith.mulf %39, %19 : vector<8x32xf32>
      %c0_22 = arith.constant 0 : index
      %c0_23 = arith.constant 0 : index
      %c96 = arith.constant 96 : index
      %41 = vector.load %arg6[%c0_22, %c0_23, %c96] : memref<1x8x1152xf32, #tpu.memory_space<vmem>>, vector<1x8x32xf32>
      %42 = vector.shape_cast %41 : vector<1x8x32xf32> to vector<8x32xf32>
      %43 = vector.shape_cast %40 : vector<8x32xf32> to vector<1x8x32xf32>
      tpu.vector_store %arg6[%c0_22, %c0_23, %c96], %43 {strides = array<i32>} : memref<1x8x1152xf32, #tpu.memory_space<vmem>>, vector<1x8x32xf32>,
      %44 = vector.extract_strided_slice %19 {offsets = [0, 4], sizes = [8, 1], strides = [1, 1]} : vector<8x32xf32> to vector<8x1xf32>
      %45 = vector.broadcast %44 : vector<8x1xf32> to vector<8x32xf32>
      %46 = arith.mulf %45, %19 : vector<8x32xf32>
      %c0_24 = arith.constant 0 : index
      %c0_25 = arith.constant 0 : index
      %c128 = arith.constant 128 : index
      %47 = vector.load %arg6[%c0_24, %c0_25, %c128] : memref<1x8x1152xf32, #tpu.memory_space<vmem>>, vector<1x8x32xf32>
      %48 = vector.shape_cast %47 : vector<1x8x32xf32> to vector<8x32xf32>
      %49 = vector.shape_cast %46 : vector<8x32xf32> to vector<1x8x32xf32>
      tpu.vector_store %arg6[%c0_24, %c0_25, %c128], %49 {strides = array<i32>} : memref<1x8x1152xf32, #tpu.memory_space<vmem>>, vector<1x8x32xf32>,
      %50 = vector.extract_strided_slice %19 {offsets = [0, 5], sizes = [8, 1], strides = [1, 1]} : vector<8x32xf32> to vector<8x1xf32>
      %51 = vector.broadcast %50 : vector<8x1xf32> to vector<8x32xf32>
      %52 = arith.mulf %51, %19 : vector<8x32xf32>
      %c0_26 = arith.constant 0 : index
      %c0_27 = arith.constant 0 : index
      %c160 = arith.constant 160 : index
      %53 = vector.load %arg6[%c0_26, %c0_27, %c160] : memref<1x8x1152xf32, #tpu.memory_space<vmem>>, vector<1x8x32xf32>
      %54 = vector.shape_cast %53 : vector<1x8x32xf32> to vector<8x32xf32>
      %55 = vector.shape_cast %52 : vector<8x32xf32> to vector<1x8x32xf32>
      tpu.vector_store %arg6[%c0_26, %c0_27, %c160], %55 {strides = array<i32>} : memref<1x8x1152xf32, #tpu.memory_space<vmem>>, vector<1x8x32xf32>,
      %56 = vector.extract_strided_slice %19 {offsets = [0, 6], sizes = [8, 1], strides = [1, 1]} : vector<8x32xf32> to vector<8x1xf32>
      %57 = vector.broadcast %56 : vector<8x1xf32> to vector<8x32xf32>
      %58 = arith.mulf %57, %19 : vector<8x32xf32>
      %c0_28 = arith.constant 0 : index
      %c0_29 = arith.constant 0 : index
      %c192 = arith.constant 192 : index
      %59 = vector.load %arg6[%c0_28, %c0_29, %c192] : memref<1x8x1152xf32, #tpu.memory_space<vmem>>, vector<1x8x32xf32>
      %60 = vector.shape_cast %59 : vector<1x8x32xf32> to vector<8x32xf32>
      %61 = vector.shape_cast %58 : vector<8x32xf32> to vector<1x8x32xf32>
      tpu.vector_store %arg6[%c0_28, %c0_29, %c192], %61 {strides = array<i32>} : memref<1x8x1152xf32, #tpu.memory_space<vmem>>, vector<1x8x32xf32>,
      %62 = vector.extract_strided_slice %19 {offsets = [0, 7], sizes = [8, 1], strides = [1, 1]} : vector<8x32xf32> to vector<8x1xf32>
      %63 = vector.broadcast %62 : vector<8x1xf32> to vector<8x32xf32>
      %64 = arith.mulf %63, %19 : vector<8x32xf32>
      %c0_30 = arith.constant 0 : index
      %c0_31 = arith.constant 0 : index
      %c224 = arith.constant 224 : index
      %65 = vector.load %arg6[%c0_30, %c0_31, %c224] : memref<1x8x1152xf32, #tpu.memory_space<vmem>>, vector<1x8x32xf32>
      %66 = vector.shape_cast %65 : vector<1x8x32xf32> to vector<8x32xf32>
      %67 = vector.shape_cast %64 : vector<8x32xf32> to vector<1x8x32xf32>
      tpu.vector_store %arg6[%c0_30, %c0_31, %c224], %67 {strides = array<i32>} : memref<1x8x1152xf32, #tpu.memory_space<vmem>>, vector<1x8x32xf32>,
      %68 = vector.extract_strided_slice %19 {offsets = [0, 8], sizes = [8, 1], strides = [1, 1]} : vector<8x32xf32> to vector<8x1xf32>
      %69 = vector.broadcast %68 : vector<8x1xf32> to vector<8x32xf32>
      %70 = arith.mulf %69, %19 : vector<8x32xf32>
      %c0_32 = arith.constant 0 : index
      %c0_33 = arith.constant 0 : index
      %c256 = arith.constant 256 : index
      %71 = vector.load %arg6[%c0_32, %c0_33, %c256] : memref<1x8x1152xf32, #tpu.memory_space<vmem>>, vector<1x8x32xf32>
      %72 = vector.shape_cast %71 : vector<1x8x32xf32> to vector<8x32xf32>
      %73 = vector.shape_cast %70 : vector<8x32xf32> to vector<1x8x32xf32>
      tpu.vector_store %arg6[%c0_32, %c0_33, %c256], %73 {strides = array<i32>} : memref<1x8x1152xf32, #tpu.memory_space<vmem>>, vector<1x8x32xf32>,
      %74 = vector.extract_strided_slice %19 {offsets = [0, 9], sizes = [8, 1], strides = [1, 1]} : vector<8x32xf32> to vector<8x1xf32>
      %75 = vector.broadcast %74 : vector<8x1xf32> to vector<8x32xf32>
      %76 = arith.mulf %75, %19 : vector<8x32xf32>
      %c0_34 = arith.constant 0 : index
      %c0_35 = arith.constant 0 : index
      %c288 = arith.constant 288 : index
      %77 = vector.load %arg6[%c0_34, %c0_35, %c288] : memref<1x8x1152xf32, #tpu.memory_space<vmem>>, vector<1x8x32xf32>
      %78 = vector.shape_cast %77 : vector<1x8x32xf32> to vector<8x32xf32>
      %79 = vector.shape_cast %76 : vector<8x32xf32> to vector<1x8x32xf32>
      tpu.vector_store %arg6[%c0_34, %c0_35, %c288], %79 {strides = array<i32>} : memref<1x8x1152xf32, #tpu.memory_space<vmem>>, vector<1x8x32xf32>,
      %80 = vector.extract_strided_slice %19 {offsets = [0, 10], sizes = [8, 1], strides = [1, 1]} : vector<8x32xf32> to vector<8x1xf32>
      %81 = vector.broadcast %80 : vector<8x1xf32> to vector<8x32xf32>
      %82 = arith.mulf %81, %19 : vector<8x32xf32>
      %c0_36 = arith.constant 0 : index
      %c0_37 = arith.constant 0 : index
      %c320 = arith.constant 320 : index
      %83 = vector.load %arg6[%c0_36, %c0_37, %c320] : memref<1x8x1152xf32, #tpu.memory_space<vmem>>, vector<1x8x32xf32>
      %84 = vector.shape_cast %83 : vector<1x8x32xf32> to vector<8x32xf32>
      %85 = vector.shape_cast %82 : vector<8x32xf32> to vector<1x8x32xf32>
      tpu.vector_store %arg6[%c0_36, %c0_37, %c320], %85 {strides = array<i32>} : memref<1x8x1152xf32, #tpu.memory_space<vmem>>, vector<1x8x32xf32>,
      %86 = vector.extract_strided_slice %19 {offsets = [0, 11], sizes = [8, 1], strides = [1, 1]} : vector<8x32xf32> to vector<8x1xf32>
      %87 = vector.broadcast %86 : vector<8x1xf32> to vector<8x32xf32>
      %88 = arith.mulf %87, %19 : vector<8x32xf32>
      %c0_38 = arith.constant 0 : index
      %c0_39 = arith.constant 0 : index
      %c352 = arith.constant 352 : index
      %89 = vector.load %arg6[%c0_38, %c0_39, %c352] : memref<1x8x1152xf32, #tpu.memory_space<vmem>>, vector<1x8x32xf32>
      %90 = vector.shape_cast %89 : vector<1x8x32xf32> to vector<8x32xf32>
      %91 = vector.shape_cast %88 : vector<8x32xf32> to vector<1x8x32xf32>
      tpu.vector_store %arg6[%c0_38, %c0_39, %c352], %91 {strides = array<i32>} : memref<1x8x1152xf32, #tpu.memory_space<vmem>>, vector<1x8x32xf32>,
      %92 = vector.extract_strided_slice %19 {offsets = [0, 12], sizes = [8, 1], strides = [1, 1]} : vector<8x32xf32> to vector<8x1xf32>
      %93 = vector.broadcast %92 : vector<8x1xf32> to vector<8x32xf32>
      %94 = arith.mulf %93, %19 : vector<8x32xf32>
      %c0_40 = arith.constant 0 : index
      %c0_41 = arith.constant 0 : index
      %c384 = arith.constant 384 : index
      %95 = vector.load %arg6[%c0_40, %c0_41, %c384] : memref<1x8x1152xf32, #tpu.memory_space<vmem>>, vector<1x8x32xf32>
      %96 = vector.shape_cast %95 : vector<1x8x32xf32> to vector<8x32xf32>
      %97 = vector.shape_cast %94 : vector<8x32xf32> to vector<1x8x32xf32>
      tpu.vector_store %arg6[%c0_40, %c0_41, %c384], %97 {strides = array<i32>} : memref<1x8x1152xf32, #tpu.memory_space<vmem>>, vector<1x8x32xf32>,
      %98 = vector.extract_strided_slice %19 {offsets = [0, 13], sizes = [8, 1], strides = [1, 1]} : vector<8x32xf32> to vector<8x1xf32>
      %99 = vector.broadcast %98 : vector<8x1xf32> to vector<8x32xf32>
      %100 = arith.mulf %99, %19 : vector<8x32xf32>
      %c0_42 = arith.constant 0 : index
      %c0_43 = arith.constant 0 : index
      %c416 = arith.constant 416 : index
      %101 = vector.load %arg6[%c0_42, %c0_43, %c416] : memref<1x8x1152xf32, #tpu.memory_space<vmem>>, vector<1x8x32xf32>
      %102 = vector.shape_cast %101 : vector<1x8x32xf32> to vector<8x32xf32>
      %103 = vector.shape_cast %100 : vector<8x32xf32> to vector<1x8x32xf32>
      tpu.vector_store %arg6[%c0_42, %c0_43, %c416], %103 {strides = array<i32>} : memref<1x8x1152xf32, #tpu.memory_space<vmem>>, vector<1x8x32xf32>,
      %104 = vector.extract_strided_slice %19 {offsets = [0, 14], sizes = [8, 1], strides = [1, 1]} : vector<8x32xf32> to vector<8x1xf32>
      %105 = vector.broadcast %104 : vector<8x1xf32> to vector<8x32xf32>
      %106 = arith.mulf %105, %19 : vector<8x32xf32>
      %c0_44 = arith.constant 0 : index
      %c0_45 = arith.constant 0 : index
      %c448 = arith.constant 448 : index
      %107 = vector.load %arg6[%c0_44, %c0_45, %c448] : memref<1x8x1152xf32, #tpu.memory_space<vmem>>, vector<1x8x32xf32>
      %108 = vector.shape_cast %107 : vector<1x8x32xf32> to vector<8x32xf32>
      %109 = vector.shape_cast %106 : vector<8x32xf32> to vector<1x8x32xf32>
      tpu.vector_store %arg6[%c0_44, %c0_45, %c448], %109 {strides = array<i32>} : memref<1x8x1152xf32, #tpu.memory_space<vmem>>, vector<1x8x32xf32>,
      %110 = vector.extract_strided_slice %19 {offsets = [0, 15], sizes = [8, 1], strides = [1, 1]} : vector<8x32xf32> to vector<8x1xf32>
      %111 = vector.broadcast %110 : vector<8x1xf32> to vector<8x32xf32>
      %112 = arith.mulf %111, %19 : vector<8x32xf32>
      %c0_46 = arith.constant 0 : index
      %c0_47 = arith.constant 0 : index
      %c480 = arith.constant 480 : index
      %113 = vector.load %arg6[%c0_46, %c0_47, %c480] : memref<1x8x1152xf32, #tpu.memory_space<vmem>>, vector<1x8x32xf32>
      %114 = vector.shape_cast %113 : vector<1x8x32xf32> to vector<8x32xf32>
      %115 = vector.shape_cast %112 : vector<8x32xf32> to vector<1x8x32xf32>
      tpu.vector_store %arg6[%c0_46, %c0_47, %c480], %115 {strides = array<i32>} : memref<1x8x1152xf32, #tpu.memory_space<vmem>>, vector<1x8x32xf32>,
      %116 = vector.extract_strided_slice %19 {offsets = [0, 16], sizes = [8, 1], strides = [1, 1]} : vector<8x32xf32> to vector<8x1xf32>
      %117 = vector.broadcast %116 : vector<8x1xf32> to vector<8x32xf32>
      %118 = arith.mulf %117, %19 : vector<8x32xf32>
      %c0_48 = arith.constant 0 : index
      %c0_49 = arith.constant 0 : index
      %c512 = arith.constant 512 : index
      %119 = vector.load %arg6[%c0_48, %c0_49, %c512] : memref<1x8x1152xf32, #tpu.memory_space<vmem>>, vector<1x8x32xf32>
      %120 = vector.shape_cast %119 : vector<1x8x32xf32> to vector<8x32xf32>
      %121 = vector.shape_cast %118 : vector<8x32xf32> to vector<1x8x32xf32>
      tpu.vector_store %arg6[%c0_48, %c0_49, %c512], %121 {strides = array<i32>} : memref<1x8x1152xf32, #tpu.memory_space<vmem>>, vector<1x8x32xf32>,
      %122 = vector.extract_strided_slice %19 {offsets = [0, 17], sizes = [8, 1], strides = [1, 1]} : vector<8x32xf32> to vector<8x1xf32>
      %123 = vector.broadcast %122 : vector<8x1xf32> to vector<8x32xf32>
      %124 = arith.mulf %123, %19 : vector<8x32xf32>
      %c0_50 = arith.constant 0 : index
      %c0_51 = arith.constant 0 : index
      %c544 = arith.constant 544 : index
      %125 = vector.load %arg6[%c0_50, %c0_51, %c544] : memref<1x8x1152xf32, #tpu.memory_space<vmem>>, vector<1x8x32xf32>
      %126 = vector.shape_cast %125 : vector<1x8x32xf32> to vector<8x32xf32>
      %127 = vector.shape_cast %124 : vector<8x32xf32> to vector<1x8x32xf32>
      tpu.vector_store %arg6[%c0_50, %c0_51, %c544], %127 {strides = array<i32>} : memref<1x8x1152xf32, #tpu.memory_space<vmem>>, vector<1x8x32xf32>,
      %128 = vector.extract_strided_slice %19 {offsets = [0, 18], sizes = [8, 1], strides = [1, 1]} : vector<8x32xf32> to vector<8x1xf32>
      %129 = vector.broadcast %128 : vector<8x1xf32> to vector<8x32xf32>
      %130 = arith.mulf %129, %19 : vector<8x32xf32>
      %c0_52 = arith.constant 0 : index
      %c0_53 = arith.constant 0 : index
      %c576 = arith.constant 576 : index
      %131 = vector.load %arg6[%c0_52, %c0_53, %c576] : memref<1x8x1152xf32, #tpu.memory_space<vmem>>, vector<1x8x32xf32>
      %132 = vector.shape_cast %131 : vector<1x8x32xf32> to vector<8x32xf32>
      %133 = vector.shape_cast %130 : vector<8x32xf32> to vector<1x8x32xf32>
      tpu.vector_store %arg6[%c0_52, %c0_53, %c576], %133 {strides = array<i32>} : memref<1x8x1152xf32, #tpu.memory_space<vmem>>, vector<1x8x32xf32>,
      %134 = vector.extract_strided_slice %19 {offsets = [0, 19], sizes = [8, 1], strides = [1, 1]} : vector<8x32xf32> to vector<8x1xf32>
      %135 = vector.broadcast %134 : vector<8x1xf32> to vector<8x32xf32>
      %136 = arith.mulf %135, %19 : vector<8x32xf32>
      %c0_54 = arith.constant 0 : index
      %c0_55 = arith.constant 0 : index
      %c608 = arith.constant 608 : index
      %137 = vector.load %arg6[%c0_54, %c0_55, %c608] : memref<1x8x1152xf32, #tpu.memory_space<vmem>>, vector<1x8x32xf32>
      %138 = vector.shape_cast %137 : vector<1x8x32xf32> to vector<8x32xf32>
      %139 = vector.shape_cast %136 : vector<8x32xf32> to vector<1x8x32xf32>
      tpu.vector_store %arg6[%c0_54, %c0_55, %c608], %139 {strides = array<i32>} : memref<1x8x1152xf32, #tpu.memory_space<vmem>>, vector<1x8x32xf32>,
      %140 = vector.extract_strided_slice %19 {offsets = [0, 20], sizes = [8, 1], strides = [1, 1]} : vector<8x32xf32> to vector<8x1xf32>
      %141 = vector.broadcast %140 : vector<8x1xf32> to vector<8x32xf32>
      %142 = arith.mulf %141, %19 : vector<8x32xf32>
      %c0_56 = arith.constant 0 : index
      %c0_57 = arith.constant 0 : index
      %c640 = arith.constant 640 : index
      %143 = vector.load %arg6[%c0_56, %c0_57, %c640] : memref<1x8x1152xf32, #tpu.memory_space<vmem>>, vector<1x8x32xf32>
      %144 = vector.shape_cast %143 : vector<1x8x32xf32> to vector<8x32xf32>
      %145 = vector.shape_cast %142 : vector<8x32xf32> to vector<1x8x32xf32>
      tpu.vector_store %arg6[%c0_56, %c0_57, %c640], %145 {strides = array<i32>} : memref<1x8x1152xf32, #tpu.memory_space<vmem>>, vector<1x8x32xf32>,
      %146 = vector.extract_strided_slice %19 {offsets = [0, 21], sizes = [8, 1], strides = [1, 1]} : vector<8x32xf32> to vector<8x1xf32>
      %147 = vector.broadcast %146 : vector<8x1xf32> to vector<8x32xf32>
      %148 = arith.mulf %147, %19 : vector<8x32xf32>
      %c0_58 = arith.constant 0 : index
      %c0_59 = arith.constant 0 : index
      %c672 = arith.constant 672 : index
      %149 = vector.load %arg6[%c0_58, %c0_59, %c672] : memref<1x8x1152xf32, #tpu.memory_space<vmem>>, vector<1x8x32xf32>
      %150 = vector.shape_cast %149 : vector<1x8x32xf32> to vector<8x32xf32>
      %151 = vector.shape_cast %148 : vector<8x32xf32> to vector<1x8x32xf32>
      tpu.vector_store %arg6[%c0_58, %c0_59, %c672], %151 {strides = array<i32>} : memref<1x8x1152xf32, #tpu.memory_space<vmem>>, vector<1x8x32xf32>,
      %152 = vector.extract_strided_slice %19 {offsets = [0, 22], sizes = [8, 1], strides = [1, 1]} : vector<8x32xf32> to vector<8x1xf32>
      %153 = vector.broadcast %152 : vector<8x1xf32> to vector<8x32xf32>
      %154 = arith.mulf %153, %19 : vector<8x32xf32>
      %c0_60 = arith.constant 0 : index
      %c0_61 = arith.constant 0 : index
      %c704 = arith.constant 704 : index
      %155 = vector.load %arg6[%c0_60, %c0_61, %c704] : memref<1x8x1152xf32, #tpu.memory_space<vmem>>, vector<1x8x32xf32>
      %156 = vector.shape_cast %155 : vector<1x8x32xf32> to vector<8x32xf32>
      %157 = vector.shape_cast %154 : vector<8x32xf32> to vector<1x8x32xf32>
      tpu.vector_store %arg6[%c0_60, %c0_61, %c704], %157 {strides = array<i32>} : memref<1x8x1152xf32, #tpu.memory_space<vmem>>, vector<1x8x32xf32>,
      %158 = vector.extract_strided_slice %19 {offsets = [0, 23], sizes = [8, 1], strides = [1, 1]} : vector<8x32xf32> to vector<8x1xf32>
      %159 = vector.broadcast %158 : vector<8x1xf32> to vector<8x32xf32>
      %160 = arith.mulf %159, %19 : vector<8x32xf32>
      %c0_62 = arith.constant 0 : index
      %c0_63 = arith.constant 0 : index
      %c736 = arith.constant 736 : index
      %161 = vector.load %arg6[%c0_62, %c0_63, %c736] : memref<1x8x1152xf32, #tpu.memory_space<vmem>>, vector<1x8x32xf32>
      %162 = vector.shape_cast %161 : vector<1x8x32xf32> to vector<8x32xf32>
      %163 = vector.shape_cast %160 : vector<8x32xf32> to vector<1x8x32xf32>
      tpu.vector_store %arg6[%c0_62, %c0_63, %c736], %163 {strides = array<i32>} : memref<1x8x1152xf32, #tpu.memory_space<vmem>>, vector<1x8x32xf32>,
      %164 = vector.extract_strided_slice %19 {offsets = [0, 24], sizes = [8, 1], strides = [1, 1]} : vector<8x32xf32> to vector<8x1xf32>
      %165 = vector.broadcast %164 : vector<8x1xf32> to vector<8x32xf32>
      %166 = arith.mulf %165, %19 : vector<8x32xf32>
      %c0_64 = arith.constant 0 : index
      %c0_65 = arith.constant 0 : index
      %c768 = arith.constant 768 : index
      %167 = vector.load %arg6[%c0_64, %c0_65, %c768] : memref<1x8x1152xf32, #tpu.memory_space<vmem>>, vector<1x8x32xf32>
      %168 = vector.shape_cast %167 : vector<1x8x32xf32> to vector<8x32xf32>
      %169 = vector.shape_cast %166 : vector<8x32xf32> to vector<1x8x32xf32>
      tpu.vector_store %arg6[%c0_64, %c0_65, %c768], %169 {strides = array<i32>} : memref<1x8x1152xf32, #tpu.memory_space<vmem>>, vector<1x8x32xf32>,
      %170 = vector.extract_strided_slice %19 {offsets = [0, 25], sizes = [8, 1], strides = [1, 1]} : vector<8x32xf32> to vector<8x1xf32>
      %171 = vector.broadcast %170 : vector<8x1xf32> to vector<8x32xf32>
      %172 = arith.mulf %171, %19 : vector<8x32xf32>
      %c0_66 = arith.constant 0 : index
      %c0_67 = arith.constant 0 : index
      %c800 = arith.constant 800 : index
      %173 = vector.load %arg6[%c0_66, %c0_67, %c800] : memref<1x8x1152xf32, #tpu.memory_space<vmem>>, vector<1x8x32xf32>
      %174 = vector.shape_cast %173 : vector<1x8x32xf32> to vector<8x32xf32>
      %175 = vector.shape_cast %172 : vector<8x32xf32> to vector<1x8x32xf32>
      tpu.vector_store %arg6[%c0_66, %c0_67, %c800], %175 {strides = array<i32>} : memref<1x8x1152xf32, #tpu.memory_space<vmem>>, vector<1x8x32xf32>,
      %176 = vector.extract_strided_slice %19 {offsets = [0, 26], sizes = [8, 1], strides = [1, 1]} : vector<8x32xf32> to vector<8x1xf32>
      %177 = vector.broadcast %176 : vector<8x1xf32> to vector<8x32xf32>
      %178 = arith.mulf %177, %19 : vector<8x32xf32>
      %c0_68 = arith.constant 0 : index
      %c0_69 = arith.constant 0 : index
      %c832 = arith.constant 832 : index
      %179 = vector.load %arg6[%c0_68, %c0_69, %c832] : memref<1x8x1152xf32, #tpu.memory_space<vmem>>, vector<1x8x32xf32>
      %180 = vector.shape_cast %179 : vector<1x8x32xf32> to vector<8x32xf32>
      %181 = vector.shape_cast %178 : vector<8x32xf32> to vector<1x8x32xf32>
      tpu.vector_store %arg6[%c0_68, %c0_69, %c832], %181 {strides = array<i32>} : memref<1x8x1152xf32, #tpu.memory_space<vmem>>, vector<1x8x32xf32>,
      %182 = vector.extract_strided_slice %19 {offsets = [0, 27], sizes = [8, 1], strides = [1, 1]} : vector<8x32xf32> to vector<8x1xf32>
      %183 = vector.broadcast %182 : vector<8x1xf32> to vector<8x32xf32>
      %184 = arith.mulf %183, %19 : vector<8x32xf32>
      %c0_70 = arith.constant 0 : index
      %c0_71 = arith.constant 0 : index
      %c864 = arith.constant 864 : index
      %185 = vector.load %arg6[%c0_70, %c0_71, %c864] : memref<1x8x1152xf32, #tpu.memory_space<vmem>>, vector<1x8x32xf32>
      %186 = vector.shape_cast %185 : vector<1x8x32xf32> to vector<8x32xf32>
      %187 = vector.shape_cast %184 : vector<8x32xf32> to vector<1x8x32xf32>
      tpu.vector_store %arg6[%c0_70, %c0_71, %c864], %187 {strides = array<i32>} : memref<1x8x1152xf32, #tpu.memory_space<vmem>>, vector<1x8x32xf32>,
      %188 = vector.extract_strided_slice %19 {offsets = [0, 28], sizes = [8, 1], strides = [1, 1]} : vector<8x32xf32> to vector<8x1xf32>
      %189 = vector.broadcast %188 : vector<8x1xf32> to vector<8x32xf32>
      %190 = arith.mulf %189, %19 : vector<8x32xf32>
      %c0_72 = arith.constant 0 : index
      %c0_73 = arith.constant 0 : index
      %c896 = arith.constant 896 : index
      %191 = vector.load %arg6[%c0_72, %c0_73, %c896] : memref<1x8x1152xf32, #tpu.memory_space<vmem>>, vector<1x8x32xf32>
      %192 = vector.shape_cast %191 : vector<1x8x32xf32> to vector<8x32xf32>
      %193 = vector.shape_cast %190 : vector<8x32xf32> to vector<1x8x32xf32>
      tpu.vector_store %arg6[%c0_72, %c0_73, %c896], %193 {strides = array<i32>} : memref<1x8x1152xf32, #tpu.memory_space<vmem>>, vector<1x8x32xf32>,
      %194 = vector.extract_strided_slice %19 {offsets = [0, 29], sizes = [8, 1], strides = [1, 1]} : vector<8x32xf32> to vector<8x1xf32>
      %195 = vector.broadcast %194 : vector<8x1xf32> to vector<8x32xf32>
      %196 = arith.mulf %195, %19 : vector<8x32xf32>
      %c0_74 = arith.constant 0 : index
      %c0_75 = arith.constant 0 : index
      %c928 = arith.constant 928 : index
      %197 = vector.load %arg6[%c0_74, %c0_75, %c928] : memref<1x8x1152xf32, #tpu.memory_space<vmem>>, vector<1x8x32xf32>
      %198 = vector.shape_cast %197 : vector<1x8x32xf32> to vector<8x32xf32>
      %199 = vector.shape_cast %196 : vector<8x32xf32> to vector<1x8x32xf32>
      tpu.vector_store %arg6[%c0_74, %c0_75, %c928], %199 {strides = array<i32>} : memref<1x8x1152xf32, #tpu.memory_space<vmem>>, vector<1x8x32xf32>,
      %200 = vector.extract_strided_slice %19 {offsets = [0, 30], sizes = [8, 1], strides = [1, 1]} : vector<8x32xf32> to vector<8x1xf32>
      %201 = vector.broadcast %200 : vector<8x1xf32> to vector<8x32xf32>
      %202 = arith.mulf %201, %19 : vector<8x32xf32>
      %c0_76 = arith.constant 0 : index
      %c0_77 = arith.constant 0 : index
      %c960 = arith.constant 960 : index
      %203 = vector.load %arg6[%c0_76, %c0_77, %c960] : memref<1x8x1152xf32, #tpu.memory_space<vmem>>, vector<1x8x32xf32>
      %204 = vector.shape_cast %203 : vector<1x8x32xf32> to vector<8x32xf32>
      %205 = vector.shape_cast %202 : vector<8x32xf32> to vector<1x8x32xf32>
      tpu.vector_store %arg6[%c0_76, %c0_77, %c960], %205 {strides = array<i32>} : memref<1x8x1152xf32, #tpu.memory_space<vmem>>, vector<1x8x32xf32>,
      %206 = vector.extract_strided_slice %19 {offsets = [0, 31], sizes = [8, 1], strides = [1, 1]} : vector<8x32xf32> to vector<8x1xf32>
      %207 = vector.broadcast %206 : vector<8x1xf32> to vector<8x32xf32>
      %208 = arith.mulf %207, %19 : vector<8x32xf32>
      %c0_78 = arith.constant 0 : index
      %c0_79 = arith.constant 0 : index
      %c992 = arith.constant 992 : index
      %209 = vector.load %arg6[%c0_78, %c0_79, %c992] : memref<1x8x1152xf32, #tpu.memory_space<vmem>>, vector<1x8x32xf32>
      %210 = vector.shape_cast %209 : vector<1x8x32xf32> to vector<8x32xf32>
      %211 = vector.shape_cast %208 : vector<8x32xf32> to vector<1x8x32xf32>
      tpu.vector_store %arg6[%c0_78, %c0_79, %c992], %211 {strides = array<i32>} : memref<1x8x1152xf32, #tpu.memory_space<vmem>>, vector<1x8x32xf32>,
      %c0_80 = arith.constant 0 : index
      %c0_81 = arith.constant 0 : index
      %c1024 = arith.constant 1024 : index
      %212 = vector.load %arg6[%c0_80, %c0_81, %c1024] : memref<1x8x1152xf32, #tpu.memory_space<vmem>>, vector<1x8x32xf32>
      %213 = vector.shape_cast %212 : vector<1x8x32xf32> to vector<8x32xf32>
      %214 = vector.shape_cast %19 : vector<8x32xf32> to vector<1x8x32xf32>
      tpu.vector_store %arg6[%c0_80, %c0_81, %c1024], %214 {strides = array<i32>} : memref<1x8x1152xf32, #tpu.memory_space<vmem>>, vector<1x8x32xf32>,
      %cst_82 = arith.constant 0.000000e+00 : f32
      %215 = vector.broadcast %cst_82 : f32 to vector<8x96xf32>
      %c0_83 = arith.constant 0 : index
      %c0_84 = arith.constant 0 : index
      %c1056 = arith.constant 1056 : index
      %216 = vector.load %arg6[%c0_83, %c0_84, %c1056] : memref<1x8x1152xf32, #tpu.memory_space<vmem>>, vector<1x8x96xf32>
      %217 = vector.shape_cast %216 : vector<1x8x96xf32> to vector<8x96xf32>
      %218 = vector.shape_cast %215 : vector<8x96xf32> to vector<1x8x96xf32>
      tpu.vector_store %arg6[%c0_83, %c0_84, %c1056], %218 {strides = array<i32>} : memref<1x8x1152xf32, #tpu.memory_space<vmem>>, vector<1x8x96xf32>,
    } else {
    }
    %c0_i32_2 = arith.constant 0 : i32
    %5 = arith.cmpi eq, %arg2, %c0_i32_2 : i32
    %6 = arith.extui %5 : i1 to i32
    %c0_i32_3 = arith.constant 0 : i32
    %7 = arith.cmpi ne, %6, %c0_i32_3 : i32
    scf.if %7 {
      %cst_13 = arith.constant 0.000000e+00 : f32
      %19 = vector.broadcast %cst_13 : f32 to vector<8x16xf32>
      %c0_14 = arith.constant 0 : index
      %c0_15 = arith.constant 0 : index
      %20 = vector.load %arg7[%c0_14, %c0_15] : memref<8x16xf32, #tpu.memory_space<vmem>>, vector<8x16xf32>
      tpu.vector_store %arg7[%c0_14, %c0_15], %19 {strides = array<i32>} : memref<8x16xf32, #tpu.memory_space<vmem>>, vector<8x16xf32>,
    } else {
    }
    %c0 = arith.constant 0 : index
    %c0_4 = arith.constant 0 : index
    %8 = vector.load %arg7[%c0, %c0_4] : memref<8x16xf32, #tpu.memory_space<vmem>>, vector<8x16xf32>
    %9 = arith.index_cast %arg2 : i32 to index
    %c0_5 = arith.constant 0 : index
    %c0_6 = arith.constant 0 : index
    %10 = vector.load %arg6[%9, %c0_5, %c0_6] : memref<1x8x1152xf32, #tpu.memory_space<vmem>>, vector<1x8x1152xf32>
    %11 = vector.shape_cast %10 : vector<1x8x1152xf32> to vector<8x1152xf32>
    %c0_7 = arith.constant 0 : index
    %c0_8 = arith.constant 0 : index
    %12 = vector.load %arg4[%c0_7, %c0_8] : memref<16x1152xf32, #tpu.memory_space<vmem>>, vector<16x1152xf32>
    %cst = arith.constant dense<0.000000e+00> : vector<8x16xf32>
    %13 = tpu.matmul %11, %12, %cst {dimension_numbers = #tpu.dot_dimension_numbers<[1], [1], [0], [0], [0, 0, 1, 0], [], []>} : vector<8x1152xf32>, vector<16x1152xf32>, vector<8x16xf32> -> vector<8x16xf32>
    %14 = arith.addf %8, %13 : vector<8x16xf32>
    %c0_9 = arith.constant 0 : index
    %c0_10 = arith.constant 0 : index
    %15 = vector.load %arg7[%c0_9, %c0_10] : memref<8x16xf32, #tpu.memory_space<vmem>>, vector<8x16xf32>
    tpu.vector_store %arg7[%c0_9, %c0_10], %14 {strides = array<i32>} : memref<8x16xf32, #tpu.memory_space<vmem>>, vector<8x16xf32>,
    %c0_i32_11 = arith.constant 0 : i32
    %16 = arith.cmpi eq, %arg2, %c0_i32_11 : i32
    %17 = arith.extui %16 : i1 to i32
    %c0_i32_12 = arith.constant 0 : i32
    %18 = arith.cmpi ne, %17, %c0_i32_12 : i32
    scf.if %18 {
      %c0_13 = arith.constant 0 : index
      %c0_14 = arith.constant 0 : index
      %19 = vector.load %arg7[%c0_13, %c0_14] : memref<8x16xf32, #tpu.memory_space<vmem>>, vector<8x16xf32>
      %cst_15 = arith.constant 5.000000e-01 : f32
      %20 = vector.broadcast %cst_15 : f32 to vector<8x16xf32>
      %21 = arith.mulf %19, %20 : vector<8x16xf32>
      %c0_16 = arith.constant 0 : index
      %c0_17 = arith.constant 0 : index
      %22 = vector.load %arg5[%c0_16, %c0_17] : memref<8x16xf32, #tpu.memory_space<vmem>>, vector<8x16xf32>
      tpu.vector_store %arg5[%c0_16, %c0_17], %21 {strides = array<i32>} : memref<8x16xf32, #tpu.memory_space<vmem>>, vector<8x16xf32>,
    } else {
    }
    return
  }
  func.func @transform_0(%arg0: i32, %arg1: i32, %arg2: i32) -> (i32, i32) {
    %c0_i32 = arith.constant 0 : i32
    %c0_i32_0 = arith.constant 0 : i32
    return %arg1, %c0_i32 : i32, i32
  }
  func.func @transform_1(%arg0: i32, %arg1: i32, %arg2: i32) -> (i32, i32) {
    %c0_i32 = arith.constant 0 : i32
    return %arg0, %arg2 : i32, i32
  }
  func.func @transform_2(%arg0: i32, %arg1: i32, %arg2: i32) -> (i32, i32) {
    %c0_i32 = arith.constant 0 : i32
    return %arg1, %arg0 : i32, i32
  }
}

</mosaic_0001>

<bundles_post_ra>
// kernel: general_quadratic.1
= control target key start
LH: loop header
LB: loop body
LE: loop exit
PB: predicated region body
PF: predicated region fallthrough
CT: control target
= control target key end

     0   :  { %v651_v1 = vmov 9   ;;  %v652_v2 = vmov 0   ;;  %s890_s0 = inlined_call_operand.vmem [shape: f32[8,32], index: 0, kind: input, shape index: {}]   ;;  %s891_s1 = inlined_call_operand.vmem [shape: f32[16,1152], index: 1, kind: input, shape index: {}]   ;;  %s892_s2 = inlined_call_operand.hbm [shape: f32[8,16], index: 2, kind: output, shape index: {}]  }
   0x1   :  { %v706_v0 = vld [vmem:[%s890_s0] sm:$0xff]  ;;  %595 = vset.pattern.permute.xlu1 %v651_v1  ;;  %593 = vset.pattern.permute.xlu0 %v652_v2 }
   0x2   :  { %103 = vperm.xlu1 %595, %v706_v0   ;;  %21 = vperm.xlu0 %593, %v706_v0  }
   0x3   :  { %7 = vsyncpa [#allocation5], 0  ;;  %v653_v3 = vmov 10   ;;  %v654_v4 = vmov 13   ;;  %v655_v5 = vmov 1   ;;  %v656_v6 = vmov 11  }
   0x4   :  { %596 = vset.pattern.permute.xlu2 %v653_v3  ;;  %v657_v7 = vmov 3   ;;  %v658_v8 = vmov 14   ;;  %v659_v9 = vmov 2   ;;  %v660_v10 = vmov 15   ;;  %s680_s0 = smov 64   ;;  %s682_s11 = smov 32  }
   0x5   :  { %113 = vperm.xlu2 %596, %v706_v0   ;;  %v661_v11 = vmov 7   ;;  %v662_v12 = vmov 5   ;;  %v663_v13 = vmov 25   ;;  %v664_v14 = vmov 29   ;;  %s684_s12 = smov 96   ;;  %s547_s23 = sshll.u32 %s892_s2, 4  ;;  %s548_s23 = int_to_ptr.hbm [resolvable:$true] %s547_s23 }
   0x6   :  { %v665_v15 = vmov 6   ;;  %v666_v16 = vmov 17   ;;  %v667_v17 = vmov 31   ;;  %v668_v18 = vmov 26  }
   0x7   :  { %v669_v19 = vmov 18   ;;  %v670_v20 = vmov 27   ;;  %v671_v21 = vmov 19   ;;  %v672_v22 = vmov 30  }
   0x8   :  { %v673_v23 = vmov 22   ;;  %v674_v24 = vmov 21   ;;  %v675_v25 = vmov 8   ;;  %v676_v26 = vmov 23  }
   0x9   :  { %vm25_vm0 = vcmask 261120   ;;  %v677_v27 = vmov 4   ;;  %v678_v28 = vmov 12   ;;  %v679_v30 = vmov 24  }
   0xa   :  { %598 = vset.pattern.permute.xlu1 %v654_v4  ;;  %594 = vset.pattern.permute.xlu0 %v655_v5  ;;  %312 = vst.msk [vmem:[#allocation2 + $0x40] sm:$0xff] %vm25_vm0, %v706_v0  ;;  %v681_v35 = vmov 28   ;;  %v683_v42 = vmov 16   ;;  %vm36_vm1 = vcmask 523520   ;;  %vm47_vm2 = vcmask 785920  }
   0xb   :  { %139 = vperm.xlu1 %598, %v706_v0   ;;  %28 = vperm.xlu0 %594, %v706_v0   ;;  %vm58_vm3 = vcmask 1048320   ;;  %vm313_vm4 = vcmask 1047808   ;;  %vm318_vm5 = vcmask 130048  }
   0xd   :  { %597 = vset.pattern.permute.xlu2 %v656_v6  ;;  %v685_v6 = vmov 20  }
   0xe   :  { %123 = vperm.xlu2 %597, %v706_v0  }
  0x13   :  { %601 = vset.pattern.permute.xlu1 %v657_v7  ;;  %600 = vset.pattern.permute.xlu0 %v658_v8 }
  0x14   :  { %50 = vperm.xlu1 %601, %v706_v0   ;;  %149 = vperm.xlu0 %600, %v706_v0  }
  0x16   :  { %599 = vset.pattern.permute.xlu2 %v659_v9 }
  0x17   :  { %39 = vperm.xlu2 %599, %v706_v0  }
  0x1c   :  { %603 = vset.pattern.permute.xlu1 %v660_v10  ;;  %605 = vset.pattern.permute.xlu0 %v661_v11 }
  0x1d   :  { %159 = vperm.xlu1 %603, %v706_v0   ;;  %87 = vperm.xlu0 %605, %v706_v0  }
  0x1f   :  { %602 = vset.pattern.permute.xlu2 %v662_v12 }
  0x20   :  { %67 = vperm.xlu2 %602, %v706_v0  }
  0x25   :  { %606 = vset.pattern.permute.xlu1 %v663_v13  ;;  %610 = vset.pattern.permute.xlu0 %v664_v14 }
  0x26   :  { %247 = vperm.xlu1 %606, %v706_v0   ;;  %283 = vperm.xlu0 %610, %v706_v0  }
  0x28   :  { %604 = vset.pattern.permute.xlu2 %v665_v15 }
  0x29   :  { %77 = vperm.xlu2 %604, %v706_v0  }
  0x2e   :  { %608 = vset.pattern.permute.xlu1 %v666_v16  ;;  %615 = vset.pattern.permute.xlu0 %v667_v17 }
  0x2f   :  { %175 = vperm.xlu1 %608, %v706_v0   ;;  %303 = vperm.xlu0 %615, %v706_v0  }
  0x31   :  { %607 = vset.pattern.permute.xlu2 %v668_v18 }
  0x32   :  { %257 = vperm.xlu2 %607, %v706_v0  }
  0x37   :  { %611 = vset.pattern.permute.xlu1 %v669_v19 }
  0x38   :  { %185 = vperm.xlu1 %611, %v706_v0  }
  0x3a   :  { %609 = vset.pattern.permute.xlu2 %v670_v20 }
  0x3b   :  { %267 = vperm.xlu2 %609, %v706_v0  }
  0x40   :  { %613 = vset.pattern.permute.xlu1 %v671_v21 }
  0x41   :  { %195 = vperm.xlu1 %613, %v706_v0  }
  0x43   :  { %612 = vset.pattern.permute.xlu2 %v672_v22 }
  0x44   :  { %293 = vperm.xlu2 %612, %v706_v0  }
  0x49   :  { %616 = vset.pattern.permute.xlu1 %v673_v23 }
  0x4a   :  { %221 = vperm.xlu1 %616, %v706_v0  }
  0x4c   :  { %614 = vset.pattern.permute.xlu2 %v674_v24 }
  0x4d   :  { %211 = vperm.xlu2 %614, %v706_v0  }
  0x52   :  { %618 = vset.pattern.permute.xlu1 %v675_v25 }
  0x53   :  { %97 = vperm.xlu1 %618, %v706_v0  }
  0x55   :  { %617 = vset.pattern.permute.xlu2 %v676_v26 }
  0x56   :  { %231 = vperm.xlu2 %617, %v706_v0  }
  0x5b   :  { %620 = vset.pattern.permute.xlu1 %v677_v27 }
  0x5c   :  { %61 = vperm.xlu1 %620, %v706_v0  }
  0x5e   :  { %619 = vset.pattern.permute.xlu2 %v678_v28 }
  0x5f   :  { %133 = vperm.xlu2 %619, %v706_v0   ;;  %v114_v29 = vpop.permute.xlu2 %113 }
  0x60   :  { %v116_v32 = vmul.f32 %v114_v29, %v706_v0 }
  0x64   :  { %622 = vset.pattern.permute.xlu1 %v683_v42  ;;  %v334_v42 = vld [vmem:[%s891_s1 + $0x8] sm:$0xff] }
  0x67   :  { %621 = vset.pattern.permute.xlu2 %v679_v30  ;;  %v344_v30 = vld [vmem:[%s891_s1 + $0x58] sm:$0xff] }
  0x68   :  { %241 = vperm.xlu2 %621, %v706_v0   ;;  %v124_v31 = vpop.permute.xlu2 %123  ;;  %405 = vmatpush.xpose.msra.mxu2 %v344_v30 }
  0x69   :  { %v126_v43 = vmul.f32 %v124_v31, %v706_v0  ;;  %v335_v31 = vld [vmem:[%s891_s1 + $0x10] sm:$0xff] }
  0x6c   :  { %406 = vmatpush.xpose.msra.mxu2 %v335_v31 }
  0x70   :  { %118 = vrot.lane.b32.xlu2 %v116_v32, %s680_s0 }
  0x71   :  { %v40_v33 = vpop.permute.xlu2 %39  ;;  %623 = vset.pattern.permute.xlu2 %v681_v35  ;;  %v342_v35 = vld [vmem:[%s891_s1 + $0x48] sm:$0xff] }
  0x72   :  { %v42_v34 = vmul.f32 %v40_v33, %v706_v0  ;;  %365 = vmatpush.xpose.msra.mxu0 %v342_v35 }
  0x74   :  { %v104_v36 = vpop.permute.xlu1 %103  ;;  %v22_v37 = vpop.permute.xlu0 %21 }
  0x75   :  { %v106_v38 = vmul.f32 %v104_v36, %v706_v0  ;;  %v24_v39 = vmul.f32 %v22_v37, %v706_v0  ;;  %v345_v36 = vld [vmem:[%s891_s1 + $0x60] sm:$0xff] }
  0x76   :  { %v333_v37 = vld [vmem:[%s891_s1] sm:$0xff]  ;;  %425 = vmatpush.xpose.msra.mxu3 %v345_v36 }
  0x77   :  { %26 = vst.msk [vmem:[#allocation2] sm:$0xff] %vm25_vm0, %v24_v39  ;;  %108 = vrot.lane.b32.xlu0 %v106_v38, %s682_s11  ;;  %366 = vmatpush.xpose.msra.mxu0 %v333_v37  ;;  %v336_v39 = vld [vmem:[%s891_s1 + $0x18] sm:$0xff] }
  0x78   :  { %44 = vrot.lane.b32.xlu2 %v42_v34, %s680_s0 }
  0x7a   :  { %v68_v40 = vpop.permute.xlu2 %67  ;;  %426 = vmatpush.xpose.msra.mxu3 %v336_v39 }
  0x7b   :  { %v70_v41 = vmul.f32 %v68_v40, %v706_v0 }
  0x7d   :  { %v29_v44 = vpop.permute.xlu0 %28  ;;  %v140_v45 = vpop.permute.xlu1 %139 }
  0x7e   :  { %v31_v46 = vmul.f32 %v29_v44, %v706_v0  ;;  %v142_v48 = vmul.f32 %v140_v45, %v706_v0 }
  0x7f   :  { %128 = vrot.lane.b32.xlu0 %v126_v43, %s684_s12 }
  0x80   :  { %72 = vrot.lane.b32.xlu2 %v70_v41, %s682_s11  ;;  %33 = vrot.lane.b32.xlu1 %v31_v46, %s682_s11  ;;  %v343_v41 = vld [vmem:[%s891_s1 + $0x50] sm:$0xff] }
  0x81   :  { %385 = vmatpush.xpose.msra.mxu1 %v343_v41 }
  0x83   :  { %v78_v47 = vpop.permute.xlu2 %77 }
  0x84   :  { %v80_v59 = vmul.f32 %v78_v47, %v706_v0 }
  0x85   :  { %386 = vmatpush.xpose.msra.mxu1 %v334_v42 }
  0x86   :  { %v51_v49 = vpop.permute.xlu1 %50  ;;  %v150_v50 = vpop.permute.xlu0 %149 }
  0x87   :  { %v152_v51 = vmul.f32 %v150_v50, %v706_v0  ;;  %v53_v54 = vmul.f32 %v51_v49, %v706_v0 }
  0x88   :  { %277 = vperm.xlu2 %623, %v706_v0   ;;  %144 = vrot.lane.b32.xlu1 %v142_v48, %s682_s11 }
  0x89   :  { %154 = vrot.lane.b32.xlu0 %v152_v51, %s680_s0  ;;  %v348_v51 = vld [vmem:[%s891_s1 + $0x78] sm:$0xff] }
  0x8a   :  { %485 = vmatpush.xpose.msrb.mxu2 %v348_v51 }
  0x8c   :  { %v258_v52 = vpop.permute.xlu2 %257 }
  0x8d   :  { %v260_v53 = vmul.f32 %v258_v52, %v706_v0  ;;  %v346_v52 = vld [vmem:[%s891_s1 + $0x68] sm:$0xff] }
  0x8e   :  { %445 = vmatpush.xpose.msrb.mxu0 %v346_v52 }
  0x8f   :  { %v160_v55 = vpop.permute.xlu1 %159  ;;  %v88_v57 = vpop.permute.xlu0 %87 }
  0x90   :  { %262 = vrot.lane.b32.xlu2 %v260_v53, %s680_s0  ;;  %v162_v56 = vmul.f32 %v160_v55, %v706_v0  ;;  %55 = vrot.lane.b32.xlu1 %v53_v54, %s684_s12  ;;  %v90_v60 = vmul.f32 %v88_v57, %v706_v0  ;;  %v339_v53 = vld [vmem:[%s891_s1 + $0x30] sm:$0xff]  ;;  %v337_v54 = vld [vmem:[%s891_s1 + $0x20] sm:$0xff] }
  0x91   :  { %486 = vmatpush.xpose.msrb.mxu2 %v339_v53 }
  0x92   :  { %164 = vrot.lane.b32.xlu0 %v162_v56, %s684_s12  ;;  %446 = vmatpush.xpose.msrb.mxu0 %v337_v54 }
  0x95   :  { %v268_v58 = vpop.permute.xlu2 %267 }
  0x96   :  { %v270_v9 = vmul.f32 %v268_v58, %v706_v0 }
  0x98   :  { %82 = vrot.lane.b32.xlu1 %v80_v59, %s680_s0  ;;  %v248_v61 = vpop.permute.xlu1 %247  ;;  %v284_v62 = vpop.permute.xlu0 %283 }
  0x99   :  { %v286_v63 = vmul.f32 %v284_v62, %v706_v0  ;;  %v250_v2 = vmul.f32 %v248_v61, %v706_v0 }
  0x9a   :  { %92 = vrot.lane.b32.xlu0 %v90_v60, %s684_s12 }
  0x9b   :  { %288 = vrot.lane.b32.xlu2 %v286_v63, %s682_s11  ;;  %v349_v63 = vld [vmem:[%s891_s1 + $0x80] sm:$0xff] }
  0x9c   :  { %505 = vmatpush.xpose.msrb.mxu3 %v349_v63 }
  0x9e   :  { %v294_v1 = vpop.permute.xlu2 %293 }
  0x9f   :  { %v296_v14 = vmul.f32 %v294_v1, %v706_v0  ;;  %v347_v1 = vld [vmem:[%s891_s1 + $0x70] sm:$0xff] }
  0xa0   :  { %169 = vperm.xlu1 %622, %v706_v0   ;;  %465 = vmatpush.xpose.msrb.mxu1 %v347_v1 }
  0xa1   :  { %v176_v3 = vpop.permute.xlu1 %175  ;;  %v304_v17 = vpop.permute.xlu0 %303 }
  0xa2   :  { %252 = vrot.lane.b32.xlu0 %v250_v2, %s682_s11  ;;  %v178_v4 = vmul.f32 %v176_v3, %v706_v0  ;;  %v306_v19 = vmul.f32 %v304_v17, %v706_v0  ;;  %v340_v2 = vld [vmem:[%s891_s1 + $0x38] sm:$0xff]  ;;  %v338_v3 = vld [vmem:[%s891_s1 + $0x28] sm:$0xff] }
  0xa3   :  { %506 = vmatpush.xpose.msrb.mxu3 %v340_v2 }
  0xa4   :  { %466 = vmatpush.xpose.msrb.mxu1 %v338_v3 }
  0xa7   :  { %v212_v5 = vpop.permute.xlu2 %211 }
  0xa8   :  { %624 = vset.pattern.permute.xlu1 %v685_v6  ;;  %v214_v13 = vmul.f32 %v212_v5, %v706_v0 }
  0xa9   :  { %205 = vperm.xlu1 %624, %v706_v0  }
  0xaa   :  { %180 = vrot.lane.b32.xlu0 %v178_v4, %s682_s11  ;;  %v186_v7 = vpop.permute.xlu1 %185 }
  0xab   :  { %v188_v8 = vmul.f32 %v186_v7, %v706_v0  ;;  %v350_v7 = vld [vmem:[%s891_s1 + $0x88] sm:$0xff] }
  0xb0   :  { %v232_v10 = vpop.permute.xlu2 %231 }
  0xb1   :  { %272 = vrot.lane.b32.xlu1 %v270_v9, %s684_s12  ;;  %v234_v21 = vmul.f32 %v232_v10, %v706_v0  ;;  %v686_v9 = vmov 0.0  }
  0xb2   :  { %190 = vrot.lane.b32.xlu0 %v188_v8, %s680_s0  ;;  %v341_v8 = vld [vmem:[%s891_s1 + $0x40] sm:$0xff]  ;;  %314 = vst.msk [vmem:[#allocation2 + $0x40] sm:$0xff] %vm313_vm4, %v686_v9  ;;  %s687_s1 = smov [#allocation4]  }
  0xb3   :  { %v196_v11 = vpop.permute.xlu1 %195  ;;  %319 = vst.msk [vmem:[#allocation3] sm:$0xff] %vm318_vm5, %v686_v9  ;;  %s545_s20 = sshll.u32 %s687_s1, 4  ;;  %s546_s20 = int_to_ptr.vmem [resolvable:$true] %s545_s20 }
  0xb4   :  { %v198_v12 = vmul.f32 %v196_v11, %v706_v0 }
  0xb6   :  { %200 = vrot.lane.b32.xlu2 %v198_v12, %s684_s12 }
  0xb9   :  { %v134_v15 = vpop.permute.xlu2 %133  ;;  %298 = vrot.lane.b32.xlu1 %v296_v14, %s680_s0 }
  0xba   :  { %v136_v16 = vmul.f32 %v134_v15, %v706_v0  ;;  %216 = vrot.lane.b32.xlu0 %v214_v13, %s682_s11 }
  0xbc   :  { %137 = vst.msk [vmem:[#allocation2 + $0x18] sm:$0xff] %vm25_vm0, %v136_v16  ;;  %v222_v18 = vpop.permute.xlu1 %221 }
  0xbd   :  { %v224_v20 = vmul.f32 %v222_v18, %v706_v0  ;;  %v332_v18 = vld [vmem:[#allocation2 + $0x40] sm:$0xff] }
  0xbf   :  { %226 = vrot.lane.b32.xlu2 %v224_v20, %s680_s0 }
  0xc1   :  { %308 = vrot.lane.b32.xlu1 %v306_v19, %s684_s12 }
  0xc2   :  { %v242_v22 = vpop.permute.xlu2 %241  ;;  %236 = vrot.lane.b32.xlu0 %v234_v21, %s684_s12 }
  0xc3   :  { %v244_v23 = vmul.f32 %v242_v22, %v706_v0 }
  0xc5   :  { %245 = vst.msk [vmem:[#allocation2 + $0x30] sm:$0xff] %vm25_vm0, %v244_v23  ;;  %v98_v24 = vpop.permute.xlu1 %97 }
  0xc6   :  { %v100_v25 = vmul.f32 %v98_v24, %v706_v0 }
  0xc8   :  { %101 = vst.msk [vmem:[#allocation2 + $0x10] sm:$0xff] %vm25_vm0, %v100_v25 }
  0xca   :  { %v119_v26 = vpop.permute.xlu2 %118 }
  0xce   :  { %v62_v27 = vpop.permute.xlu1 %61 }
  0xcf   :  { %v64_v28 = vmul.f32 %v62_v27, %v706_v0 }
  0xd1   :  { %65 = vst.msk [vmem:[#allocation2 + $0x8] sm:$0xff] %vm25_vm0, %v64_v28 }
  0xd2   :  { %v45_v29 = vpop.permute.xlu2 %44 }
  0xda   :  { %v73_v32 = vpop.permute.xlu2 %72 }
  0xdb   :  { %75 = vst.msk [vmem:[#allocation2 + $0x8] sm:$0xff] %vm36_vm1, %v73_v32 }
  0xe2   :  { %v278_v33 = vpop.permute.xlu2 %277 }
  0xe3   :  { %v280_v34 = vmul.f32 %v278_v33, %v706_v0 }
  0xe5   :  { %281 = vst.msk [vmem:[#allocation2 + $0x38] sm:$0xff] %vm25_vm0, %v280_v34 }
  0xe9   :  { %v109_v38 = vpop.permute.xlu0 %108 }
  0xea   :  { %111 = vst.msk [vmem:[#allocation2 + $0x10] sm:$0xff] %vm36_vm1, %v109_v38  ;;  %v263_v40 = vpop.permute.xlu2 %262  ;;  %v320_v38 = vld [vmem:[#allocation3] sm:$0xff] }
  0xeb   :  { %121 = vst.msk [vmem:[#allocation2 + $0x10] sm:$0xff] %vm47_vm2, %v119_v26 }
  0xf1   :  { %v129_v43 = vpop.permute.xlu0 %128 }
  0xf2   :  { %131 = vst.msk [vmem:[#allocation2 + $0x10] sm:$0xff] %vm58_vm3, %v129_v43  ;;  %v34_v44 = vpop.permute.xlu1 %33 }
  0xf3   :  { %37 = vst.msk [vmem:[#allocation2] sm:$0xff] %vm36_vm1, %v34_v44 }
  0xf4   :  { %48 = vst.msk [vmem:[#allocation2] sm:$0xff] %vm47_vm2, %v45_v29 }
  0xf5   :  { %v289_v45 = vpop.permute.xlu2 %288 }
  0xf6   :  { %291 = vst.msk [vmem:[#allocation2 + $0x38] sm:$0xff] %vm36_vm1, %v289_v45 }
  0xf9   :  { %v326_v46 = vld [vmem:[#allocation2 + $0x10] sm:$0xff] }
  0xfa   :  { %v145_v47 = vpop.permute.xlu1 %144  ;;  %407 = vmatmul.f32.vlgmr.msra.gmra.mxu2 %v326_v46 }
  0xfb   :  { %147 = vst.msk [vmem:[#allocation2 + $0x18] sm:$0xff] %vm36_vm1, %v145_v47  ;;  %v155_v48 = vpop.permute.xlu0 %154 }
  0xfc   :  { %157 = vst.msk [vmem:[#allocation2 + $0x18] sm:$0xff] %vm47_vm2, %v155_v48 }
 0x102   :  { %v56_v49 = vpop.permute.xlu1 %55 }
 0x103   :  { %59 = vst.msk [vmem:[#allocation2] sm:$0xff] %vm58_vm3, %v56_v49 }
 0x104   :  { %v165_v50 = vpop.permute.xlu0 %164 }
 0x105   :  { %167 = vst.msk [vmem:[#allocation2 + $0x18] sm:$0xff] %vm58_vm3, %v165_v50 }
 0x10a   :  { %v83_v55 = vpop.permute.xlu1 %82  ;;  %v324_v56 = vld [vmem:[#allocation2] sm:$0xff] }
 0x10b   :  { %85 = vst.msk [vmem:[#allocation2 + $0x8] sm:$0xff] %vm47_vm2, %v83_v55  ;;  %367 = vmatmul.f32.vlgmr.msra.gmra.mxu0 %v324_v56 }
 0x10c   :  { %v93_v57 = vpop.permute.xlu0 %92  ;;  %v327_v58 = vld [vmem:[#allocation2 + $0x18] sm:$0xff]  ;;  %525 = vmatpush.xpose.msra.mxu0 %v350_v7 }
 0x10d   :  { %95 = vst.msk [vmem:[#allocation2 + $0x8] sm:$0xff] %vm58_vm3, %v93_v57  ;;  %427 = vmatmul.f32.vlgmr.msra.gmra.mxu3 %v327_v58 }
 0x110   :  { %526 = vmatpush.xpose.msra.mxu0 %v341_v8 }
 0x112   :  { %v170_v59 = vpop.permute.xlu1 %169 }
 0x113   :  { %v172_v60 = vmul.f32 %v170_v59, %v706_v0 }
 0x114   :  { %v253_v61 = vpop.permute.xlu0 %252  ;;  %v325_v62 = vld [vmem:[#allocation2 + $0x8] sm:$0xff] }
 0x115   :  { %173 = vst.msk [vmem:[#allocation2 + $0x20] sm:$0xff] %vm25_vm0, %v172_v60  ;;  %387 = vmatmul.f32.vlgmr.msra.gmra.mxu1 %v325_v62 }
 0x116   :  { %255 = vst.msk [vmem:[#allocation2 + $0x30] sm:$0xff] %vm36_vm1, %v253_v61 }
 0x117   :  { %265 = vst.msk [vmem:[#allocation2 + $0x30] sm:$0xff] %vm47_vm2, %v263_v40 }
 0x11b   :  { %v206_v4 = vpop.permute.xlu1 %205 }
 0x11c   :  { %v208_v5 = vmul.f32 %v206_v4, %v706_v0  ;;  %v181_v6 = vpop.permute.xlu0 %180  ;;  %v201_v0 = vpop.permute.xlu2 %200 }
 0x11d   :  { %183 = vst.msk [vmem:[#allocation2 + $0x20] sm:$0xff] %vm36_vm1, %v181_v6 }
 0x11e   :  { %209 = vst.msk [vmem:[#allocation2 + $0x28] sm:$0xff] %vm25_vm0, %v208_v5 }
 0x123   :  { %v273_v10 = vpop.permute.xlu1 %272 }
 0x124   :  { %275 = vst.msk [vmem:[#allocation2 + $0x30] sm:$0xff] %vm58_vm3, %v273_v10  ;;  %v191_v11 = vpop.permute.xlu0 %190  ;;  %v227_v14 = vpop.permute.xlu2 %226 }
 0x125   :  { %193 = vst.msk [vmem:[#allocation2 + $0x20] sm:$0xff] %vm47_vm2, %v191_v11 }
 0x126   :  { %203 = vst.msk [vmem:[#allocation2 + $0x20] sm:$0xff] %vm58_vm3, %v201_v0 }
 0x12b   :  { %v299_v12 = vpop.permute.xlu1 %298  ;;  %v330_v13 = vld [vmem:[#allocation2 + $0x30] sm:$0xff] }
 0x12c   :  { %301 = vst.msk [vmem:[#allocation2 + $0x38] sm:$0xff] %vm47_vm2, %v299_v12  ;;  %487 = vmatmul.f32.vlgmr.msrb.gmra.mxu2 %v330_v13  ;;  %v217_v15 = vpop.permute.xlu0 %216 }
 0x12d   :  { %219 = vst.msk [vmem:[#allocation2 + $0x28] sm:$0xff] %vm36_vm1, %v217_v15  ;;  %v328_v16 = vld [vmem:[#allocation2 + $0x20] sm:$0xff] }
 0x12e   :  { %447 = vmatmul.f32.vlgmr.msrb.gmra.mxu0 %v328_v16  ;;  %229 = vst.msk [vmem:[#allocation2 + $0x28] sm:$0xff] %vm47_vm2, %v227_v14 }
 0x133   :  { %v309_v17 = vpop.permute.xlu1 %308 }
 0x134   :  { %311 = vst.msk [vmem:[#allocation2 + $0x38] sm:$0xff] %vm58_vm3, %v309_v17  ;;  %v237_v19 = vpop.permute.xlu0 %236 }
 0x135   :  { %239 = vst.msk [vmem:[#allocation2 + $0x28] sm:$0xff] %vm58_vm3, %v237_v19 }
 0x136   :  { %527 = vmatmul.f32.vlgmr.msra.gmra.mxu0 %v332_v18 }
 0x13b   :  { %v331_v20 = vld [vmem:[#allocation2 + $0x38] sm:$0xff] }
 0x13c   :  { %507 = vmatmul.f32.vlgmr.msrb.gmra.mxu3 %v331_v20  ;;  %v329_v21 = vld [vmem:[#allocation2 + $0x28] sm:$0xff] }
 0x13d   :  { %467 = vmatmul.f32.vlgmr.msrb.gmra.mxu1 %v329_v21 }
 0x17d   :  { %v408_v25 = vpop.f32.mrf.mxu2 }
 0x188   :  { %v368_v23 = vpop.f32.mrf.mxu0 }
 0x190   :  { %v428_v27 = vpop.f32.mrf.mxu3 }
 0x192   :  { %v388_v22 = vpop.f32.mrf.mxu1 }
 0x193   :  { %v389_v24 = vadd.f32 %v388_v22, %v368_v23 }
 0x195   :  { %v409_v26 = vadd.f32 %v408_v25, %v389_v24 }
 0x197   :  { %v429_v29 = vadd.f32 %v428_v27, %v409_v26 }
 0x1ab   :  { %v448_v28 = vpop.f32.mrf.mxu0 }
 0x1ac   :  { %v449_v30 = vadd.f32 %v448_v28, %v429_v29 }
 0x1af   :  { %v488_v33 = vpop.f32.mrf.mxu2 }
 0x1b3   :  { %v528_v36 = vpop.f32.mrf.mxu0 }
 0x1ba   :  { %v468_v31 = vpop.f32.mrf.mxu1 }
 0x1bb   :  { %v469_v32 = vadd.f32 %v468_v31, %v449_v30 }
 0x1bd   :  { %v489_v34 = vadd.f32 %v488_v33, %v469_v32 }
 0x1bf   :  { %v508_v35 = vpop.f32.mrf.mxu3 }
 0x1c0   :  { %v509_v37 = vadd.f32 %v508_v35, %v489_v34 }
 0x1c2   :  { %v529_v39 = vadd.f32 %v528_v36, %v509_v37 }
 0x1c4   :  { %v531_v40 = vadd.f32 %v529_v39, %v320_v38 }
 0x1c6   :  { %533 = vst.msk [vmem:[#allocation3] sm:$0xff] %vm318_vm5, %v531_v40 }
 0x1cd   :  { %v537_v41 = vld [vmem:[#allocation3] sm:$0xff] }
 0x1ce   :  { %v538_v42 = vmul.f32 0.5, %v537_v41 }
 0x1d0   :  { %539 = vst.msk [vmem:[#allocation4] sm:$0xff] %vm318_vm5, %v538_v42 }
 0x1d1   :  { %550 = dma.vmem_to_hbm [thread:$0]  %s546_s20, 128, %s548_s23, [#allocation5]  }
 0x1d2   :  { %649 = dma.done.wait [#allocation5], 128  }
 0x1d3   :  { %650 = vsyncadd [#allocation5], 4294967168 }
 0x1d4   :  { %555 = vsyncpa [#allocation5], 1 }

</bundles_post_ra>
